<compile_context>
chip_gen: v7x
topology: tpu7x:2x2x1
jax: 0.10.0
libtpu: 0.0.40
codegen_flags: <defaults>
</compile_context>

<pallas_src>
import jax
import jax.numpy as jnp
from jax import lax
from jax.experimental import pallas as pl
from jax.experimental.pallas import tpu as pltpu

_LN_EPS = 1e-5  # torch.nn.LayerNorm default


def _round_up(x, m):
    return ((x + m - 1) // m) * m


# ----------------------------------------------------------------------------
# Kernels
# ----------------------------------------------------------------------------
def _make_packed_kernel(c, eps):
    """Lane-packed path: each 128-lane row holds 128//c cells of c channels."""
    inv_c = 1.0 / c

    def kernel(rank_ids_ref, xm_ref, xb_ref, g_ref, b_ref, bd_ref, o_ref):
        del rank_ids_ref  # consumed by the index_maps only
        r = xm_ref[...].astype(jnp.float32) + xb_ref[...].astype(jnp.float32)
        bd = bd_ref[...]  # (CP, CP) block-diagonal ones, f32 (0/1 -> exact)
        # Segmented (per-c-lane-group) sum AND broadcast in one MXU matmul.
        mean = jnp.dot(r, bd, preferred_element_type=jnp.float32,
                       precision=lax.Precision.HIGHEST) * inv_c
        centered = r - mean
        var = jnp.dot(centered * centered, bd,
                      preferred_element_type=jnp.float32,
                      precision=lax.Precision.HIGHEST) * inv_c
        y = centered * lax.rsqrt(var + eps) * g_ref[0] + b_ref[0]
        o_ref[...] = y.astype(o_ref.dtype)

    return kernel


def _make_plain_kernel(eps):
    """Fallback path (C already lane-dense or not a divisor of 128)."""
    def kernel(rank_ids_ref, xm_ref, xb_ref, g_ref, b_ref, o_ref):
        del rank_ids_ref
        r = xm_ref[...].astype(jnp.float32) + xb_ref[...].astype(jnp.float32)
        mean = jnp.mean(r, axis=-1, keepdims=True)
        centered = r - mean
        var = jnp.mean(centered * centered, axis=-1, keepdims=True)
        y = centered * lax.rsqrt(var + eps) * g_ref[0] + b_ref[0]
        o_ref[...] = y.astype(o_ref.dtype)

    return kernel


# ----------------------------------------------------------------------------
# Fused multi-rank residual + LayerNorm (single pallas_call)
# ----------------------------------------------------------------------------
def fused_residual_layernorm(model_xs, batch_xs, gammas, betas, *,
                             eps=_LN_EPS, max_tile_rows=512,
                             vmem_budget_bytes=6 * 1024 * 1024):
    """LayerNorm_i(model_xs[i] + batch_xs[i]) for every rank i in ONE kernel.

    model_xs / batch_xs : lists of (N_i, C) arrays (same C for all ranks).
    gammas / betas      : lists of (C,) parameter vectors (one LN per rank).
    Returns a list of (N_i, C) arrays.
    """
    num_ranks = len(model_xs)
    C = int(model_xs[0].shape[-1])
    out_dtype = model_xs[0].dtype

    # Lane-dense packing: PACK cells per 128-lane row.
    pack = 128 // C if (C < 128 and 128 % C == 0) else 1
    cp = C * pack

    # Row tile (in packed rows): as large as useful, capped by a VMEM budget
    # (2 inputs + 1 output, double-buffered -> ~6 buffers of tm*cp*4 bytes).
    # The budget is conservative enough for v7x's smaller (64 MiB) VMEM.
    tm_cap = max(8, (vmem_budget_bytes // (6 * cp * 4)) // 8 * 8)
    need = max(_round_up(-(-x.shape[0] // pack), 8) for x in model_xs)
    tm = min(max_tile_rows, tm_cap, need)
    rows_per_block = tm * pack

    # Pad every rank to whole blocks, pack lanes, concatenate along rows.
    xm_parts, xb_parts, rank_ids, meta = [], [], [], []
    for i in range(num_ranks):
        n = int(model_xs[i].shape[0])
        padded = _round_up(n, rows_per_block)
        nblk = padded // rows_per_block
        pad = padded - n
        xm = jnp.pad(model_xs[i], ((0, pad), (0, 0)))
        xb = jnp.pad(batch_xs[i], ((0, pad), (0, 0)))
        xm_parts.append(xm.reshape(padded // pack, cp))
        xb_parts.append(xb.reshape(padded // pack, cp))
        rank_ids += [i] * nblk
        meta.append((n, padded))
    xm_all = jnp.concatenate(xm_parts, axis=0)
    xb_all = jnp.concatenate(xb_parts, axis=0)
    rank_ids = jnp.asarray(rank_ids, jnp.int32)
    num_blocks = int(rank_ids.shape[0])

    # Per-rank gamma/beta, tiled to the packed lane width. Shape (R, 1, CP) so
    # the (1, 1, CP) block keeps the last two dims tile-legal.
    g_all = jnp.stack([jnp.tile(g.astype(jnp.float32), pack) for g in gammas]
                      ).reshape(num_ranks, 1, cp)
    b_all = jnp.stack([jnp.tile(b.astype(jnp.float32), pack) for b in betas]
                      ).reshape(num_ranks, 1, cp)

    x_spec = pl.BlockSpec((tm, cp), lambda i, rid: (i, 0))
    p_spec = pl.BlockSpec((1, 1, cp), lambda i, rid: (rid[i], 0, 0))
    in_specs = [x_spec, x_spec, p_spec, p_spec]
    args = [xm_all, xb_all, g_all, b_all]

    if pack > 1:
        # Block-diagonal ones matrix: sums + broadcasts within each C-lane
        # group.  Constant index_map -> stays VMEM-resident across the grid.
        lane = jnp.arange(cp)
        bd = (lane[:, None] // C == lane[None, :] // C).astype(jnp.float32)
        in_specs.append(pl.BlockSpec((cp, cp), lambda i, rid: (0, 0)))
        args.append(bd)
        kernel = _make_packed_kernel(C, eps)
    else:
        kernel = _make_plain_kernel(eps)

    out = pl.pallas_call(
        kernel,
        out_shape=jax.ShapeDtypeStruct(xm_all.shape, out_dtype),
        grid_spec=pltpu.PrefetchScalarGridSpec(
            num_scalar_prefetch=1,
            grid=(num_blocks,),
            in_specs=in_specs,
            out_specs=pl.BlockSpec((tm, cp), lambda i, rid: (i, 0)),
        ),
        compiler_params=pltpu.CompilerParams(
            dimension_semantics=("parallel",),     # row grid shards across TCs
            vmem_limit_bytes=32 * 1024 * 1024),
    )(rank_ids, *args)

    # Unpack back to per-rank (N_i, C) and drop padding rows.
    results, row = [], 0
    for n, padded in meta:
        prows = padded // pack
        results.append(out[row:row + prows].reshape(padded, C)[:n])
        row += prows
    return results


# ----------------------------------------------------------------------------
# Wrapper mirroring AbstractWrapper.__call__ / residual_connection.
# ----------------------------------------------------------------------------
class AbstractWrapperPallas:
    def __init__(self, backbone, *, out_channels, num_cell_dimensions,
                 residual_connections=True):
        self.backbone = backbone
        self.out_channels = out_channels
        self.dimensions = range(num_cell_dimensions)
        self.residual_connections = residual_connections
        # torch.nn.LayerNorm defaults: weight = ones, bias = zeros.
        self.ln_params = {
            i: (jnp.ones((out_channels,), jnp.float32),
                jnp.zeros((out_channels,), jnp.float32))
            for i in self.dimensions
        }

    def forward(self, batch):
        # TODO(synk): `forward` is abstract in the reference module; the
        # injected backbone callable stands in for a concrete subclass.
        return self.backbone(batch)

    def residual_connection(self, model_out, batch):
        ranks = [i for i in self.dimensions
                 if f"x_{i}" in batch and i in self.ln_params
                 and f"x_{i}" in model_out]
        if not ranks:
            return model_out
        outs = fused_residual_layernorm(
            [model_out[f"x_{i}"] for i in ranks],
            [batch[f"x_{i}"] for i in ranks],
            [self.ln_params[i][0] for i in ranks],
            [self.ln_params[i][1] for i in ranks])
        for i, y in zip(ranks, outs):
            model_out[f"x_{i}"] = y
        return model_out

    def __call__(self, batch):
        model_out = self.forward(batch)
        if self.residual_connections:
            model_out = self.residual_connection(model_out=model_out,
                                                 batch=batch)
        return model_out


# ----------------------------------------------------------------------------
# Reference (pure JAX) for correctness checking.
# ----------------------------------------------------------------------------
def _ref_residual_ln(x_model, x_batch, gamma, beta):
    r = (x_model + x_batch).astype(jnp.float32)
    mean = jnp.mean(r, axis=-1, keepdims=True)
    var = jnp.mean((r - mean) ** 2, axis=-1, keepdims=True)
    return ((r - mean) * lax.rsqrt(var + _LN_EPS)) * gamma + beta


if __name__ == "__main__":
    key = jax.random.PRNGKey(0)
    out_channels = 32
    num_cell_dimensions = 3
    # Cells per rank (nodes / edges / faces) — deliberately not tile-aligned
    # for rank 2 to exercise the padding path.
    n_cells = {0: 64, 1: 128, 2: 48}

    keys = jax.random.split(key, 2 * num_cell_dimensions)
    batch = {
        f"x_{i}": jax.random.normal(keys[2 * i], (n_cells[i], out_channels),
                                    jnp.float32)
        for i in range(num_cell_dimensions)
    }
    # Synthetic "backbone output" perturbation so model_out != batch.
    deltas = {
        f"x_{i}": 0.5 * jax.random.normal(keys[2 * i + 1],
                                          (n_cells[i], out_channels),
                                          jnp.float32)
        for i in range(num_cell_dimensions)
    }

    def backbone(b):
        # Simple synthetic backbone: x_i -> x_i + delta_i (plain JAX glue).
        return {k: b[k] + deltas[k] for k in b}

    wrapper = AbstractWrapperPallas(
        backbone,
        out_channels=out_channels,
        num_cell_dimensions=num_cell_dimensions,
        residual_connections=True,
    )

    model_out = wrapper(dict(batch))
    jax.block_until_ready(model_out)

    # Verify against pure-JAX reference.
    for i in range(num_cell_dimensions):
        k = f"x_{i}"
        gamma, beta = wrapper.ln_params[i]
        ref = _ref_residual_ln(batch[k] + deltas[k], batch[k], gamma, beta)
        assert model_out[k].shape == ref.shape, k
        assert jnp.allclose(model_out[k], ref, atol=1e-5, rtol=1e-5), k

    print("KERNEL_OK")
</pallas_src>

<mosaic_0001>
module attributes {stable_mosaic.version = 11 : i64} {
  func.func @kernel(%arg0: i32, %arg1: memref<3xi32, #tpu.memory_space<smem>>, %arg2: memref<32x128xf32, #tpu.memory_space<vmem>>, %arg3: memref<32x128xf32, #tpu.memory_space<vmem>>, %arg4: memref<1x1x128xf32, #tpu.memory_space<vmem>>, %arg5: memref<1x1x128xf32, #tpu.memory_space<vmem>>, %arg6: memref<128x128xf32, #tpu.memory_space<vmem>>, %arg7: memref<32x128xf32, #tpu.memory_space<vmem>>) attributes {dimension_semantics = [#tpu.dimension_semantics<parallel>], iteration_bounds = array<i64: 3>, scalar_prefetch = 1 : i64, scratch_operands = 0 : i64, tpu.core_type = #tpu.core_type<tc>, window_params = [{transform_indices = @transform_0, window_bounds = array<i64: 32, 128>}, {transform_indices = @transform_1, window_bounds = array<i64: 32, 128>}, {transform_indices = @transform_2, window_bounds = array<i64: 1, 1, 128>}, {transform_indices = @transform_3, window_bounds = array<i64: 1, 1, 128>}, {pipeline_mode = #tpu.pipeline_mode<synchronous>, transform_indices = @transform_4, window_bounds = array<i64: 128, 128>}, {transform_indices = @transform_5, window_bounds = array<i64: 32, 128>}]} {
    %c0 = arith.constant 0 : index
    %c0_0 = arith.constant 0 : index
    %0 = vector.load %arg2[%c0, %c0_0] : memref<32x128xf32, #tpu.memory_space<vmem>>, vector<32x128xf32>
    %c0_1 = arith.constant 0 : index
    %c0_2 = arith.constant 0 : index
    %1 = vector.load %arg3[%c0_1, %c0_2] : memref<32x128xf32, #tpu.memory_space<vmem>>, vector<32x128xf32>
    %2 = arith.addf %0, %1 : vector<32x128xf32>
    %c0_3 = arith.constant 0 : index
    %c0_4 = arith.constant 0 : index
    %3 = vector.load %arg6[%c0_3, %c0_4] : memref<128x128xf32, #tpu.memory_space<vmem>>, vector<128x128xf32>
    %cst = arith.constant dense<0.000000e+00> : vector<32x128xf32>
    %4 = tpu.matmul %2, %3, %cst {dimension_numbers = #tpu.dot_dimension_numbers<[1], [0], [0], [1], [0, 0, 1, 1], [], []>, precision = #tpu.contract_precision<fp32>} : vector<32x128xf32>, vector<128x128xf32>, vector<32x128xf32> -> vector<32x128xf32>
    %cst_5 = arith.constant 3.125000e-02 : f32
    %5 = vector.broadcast %cst_5 : f32 to vector<32x128xf32>
    %6 = arith.mulf %4, %5 : vector<32x128xf32>
    %7 = arith.subf %2, %6 : vector<32x128xf32>
    %8 = arith.mulf %7, %7 : vector<32x128xf32>
    %cst_6 = arith.constant dense<0.000000e+00> : vector<32x128xf32>
    %9 = tpu.matmul %8, %3, %cst_6 {dimension_numbers = #tpu.dot_dimension_numbers<[1], [0], [0], [1], [0, 0, 1, 1], [], []>, precision = #tpu.contract_precision<fp32>} : vector<32x128xf32>, vector<128x128xf32>, vector<32x128xf32> -> vector<32x128xf32>
    %cst_7 = arith.constant 3.125000e-02 : f32
    %10 = vector.broadcast %cst_7 : f32 to vector<32x128xf32>
    %11 = arith.mulf %9, %10 : vector<32x128xf32>
    %cst_8 = arith.constant 9.99999974E-6 : f32
    %12 = vector.broadcast %cst_8 : f32 to vector<32x128xf32>
    %13 = arith.addf %11, %12 : vector<32x128xf32>
    %14 = math.rsqrt %13 : vector<32x128xf32>
    %15 = arith.mulf %7, %14 : vector<32x128xf32>
    %c0_9 = arith.constant 0 : index
    %c0_10 = arith.constant 0 : index
    %c0_11 = arith.constant 0 : index
    %16 = vector.load %arg4[%c0_9, %c0_10, %c0_11] : memref<1x1x128xf32, #tpu.memory_space<vmem>>, vector<1x1x128xf32>
    %17 = vector.shape_cast %16 : vector<1x1x128xf32> to vector<1x128xf32>
    %18 = vector.broadcast %17 : vector<1x128xf32> to vector<32x128xf32>
    %19 = arith.mulf %15, %18 : vector<32x128xf32>
    %c0_12 = arith.constant 0 : index
    %c0_13 = arith.constant 0 : index
    %c0_14 = arith.constant 0 : index
    %20 = vector.load %arg5[%c0_12, %c0_13, %c0_14] : memref<1x1x128xf32, #tpu.memory_space<vmem>>, vector<1x1x128xf32>
    %21 = vector.shape_cast %20 : vector<1x1x128xf32> to vector<1x128xf32>
    %22 = vector.broadcast %21 : vector<1x128xf32> to vector<32x128xf32>
    %23 = arith.addf %19, %22 : vector<32x128xf32>
    %c0_15 = arith.constant 0 : index
    %c0_16 = arith.constant 0 : index
    %24 = vector.load %arg7[%c0_15, %c0_16] : memref<32x128xf32, #tpu.memory_space<vmem>>, vector<32x128xf32>
    tpu.vector_store %arg7[%c0_15, %c0_16], %23 {strides = array<i32>} : memref<32x128xf32, #tpu.memory_space<vmem>>, vector<32x128xf32>,
    return
  }
  func.func @transform_0(%arg0: i32, %arg1: memref<3xi32, #tpu.memory_space<smem>>) -> (i32, i32) {
    %c0_i32 = arith.constant 0 : i32
    %c0_i32_0 = arith.constant 0 : i32
    return %arg0, %c0_i32 : i32, i32
  }
  func.func @transform_1(%arg0: i32, %arg1: memref<3xi32, #tpu.memory_space<smem>>) -> (i32, i32) {
    %c0_i32 = arith.constant 0 : i32
    %c0_i32_0 = arith.constant 0 : i32
    return %arg0, %c0_i32 : i32, i32
  }
  func.func @transform_2(%arg0: i32, %arg1: memref<3xi32, #tpu.memory_space<smem>>) -> (i32, i32, i32) {
    %0 = arith.index_cast %arg0 : i32 to index
    %1 = memref.load %arg1[%0] : memref<3xi32, #tpu.memory_space<smem>>
    %c0_i32 = arith.constant 0 : i32
    %c0_i32_0 = arith.constant 0 : i32
    %c0_i32_1 = arith.constant 0 : i32
    return %1, %c0_i32, %c0_i32_0 : i32, i32, i32
  }
  func.func @transform_3(%arg0: i32, %arg1: memref<3xi32, #tpu.memory_space<smem>>) -> (i32, i32, i32) {
    %0 = arith.index_cast %arg0 : i32 to index
    %1 = memref.load %arg1[%0] : memref<3xi32, #tpu.memory_space<smem>>
    %c0_i32 = arith.constant 0 : i32
    %c0_i32_0 = arith.constant 0 : i32
    %c0_i32_1 = arith.constant 0 : i32
    return %1, %c0_i32, %c0_i32_0 : i32, i32, i32
  }
  func.func @transform_4(%arg0: i32, %arg1: memref<3xi32, #tpu.memory_space<smem>>) -> (i32, i32) {
    %c0_i32 = arith.constant 0 : i32
    %c0_i32_0 = arith.constant 0 : i32
    %c0_i32_1 = arith.constant 0 : i32
    return %c0_i32, %c0_i32_0 : i32, i32
  }
  func.func @transform_5(%arg0: i32, %arg1: memref<3xi32, #tpu.memory_space<smem>>) -> (i32, i32) {
    %c0_i32 = arith.constant 0 : i32
    %c0_i32_0 = arith.constant 0 : i32
    return %arg0, %c0_i32 : i32, i32
  }
}

</mosaic_0001>

<bundles_post_ra>
// kernel: tpu_custom_call.1
= control target key start
LH: loop header
LB: loop body
LE: loop exit
PB: predicated region body
PF: predicated region fallthrough
CT: control target
= control target key end

     0   :  { %s4393_s0 = inlined_call_operand.hbm [shape: s32[3], index: 0, kind: input, shape index: {}]   ;;  %s4394_s1 = inlined_call_operand.hbm [shape: f32[96,128], index: 1, kind: input, shape index: {}]   ;;  %s4395_s2 = inlined_call_operand.hbm [shape: f32[96,128], index: 2, kind: input, shape index: {}]   ;;  %s4396_s3 = inlined_call_operand.vmem [shape: f32[3,1,128], index: 3, kind: input, shape index: {}]   ;;  %s4397_s4 = inlined_call_operand.vmem [shape: f32[3,1,128], index: 4, kind: input, shape index: {}]   ;;  %s4398_s5 = inlined_call_operand.hbm [shape: f32[128,128], index: 5, kind: input, shape index: {}]   ;;  %s4399_s6 = inlined_call_operand.hbm [shape: f32[96,128], index: 6, kind: output, shape index: {}]  }
   0x1   :  { %4416 = sst [smem:[#allocation22_spill]] %s4394_s1  ;;  %s3326_s23 = scalar_lea.hbm %s4393_s0, 16 }
   0x2   :  { %4417 = sst [smem:[#allocation23_spill]] %s4398_s5  ;;  %p3327_p0 = scmp.ne.s32.totalorder %s4393_s0, %s3326_s23 }
   0x3   :  { %p3330_p1 = scmp.lt.u32.totalorder %s3326_s23, %s4393_s0 }
   0x5   :  { %p3332_p2 = pnand %p3330_p1, %p3327_p0 }
   0x7   :  { %3335 = shalt.err (!%p3332_p2)  }
   0x8   :  { %s3502_s28 = smov [#allocation3]  }
   0x9   :  { %12 = dma.hbm_to_smem %s4393_s0, 16, %s3502_s28, [#allocation2] }
   0xa   :  { %3468 = dma.done.wait [#allocation2], 16 }
   0xb   :  { %3469 = vsyncadd [#allocation2], 4294967280 }
   0xc   :  { %14 = sfence }
   0xd   :  { %15 = vsyncpa [#allocation5], 0 }
   0xe   :  { %17 = vsyncpa [#allocation5 + $0x1], 0 }
   0xf   :  { %18 = vsyncpa [#allocation8], 0 }
  0x10   :  { %20 = vsyncpa [#allocation8 + $0x1], 0 }
  0x11   :  { %21 = vsyncpa [#allocation6], 0 }
  0x12   :  { %23 = vsyncpa [#allocation6 + $0x1], 0  ;;  %s3558_s7 = smov 0   ;;  %s3560_s8 = smov 0  }
  0x13   :  { %s3562_s9 = smov 0   ;;  %s3564_s10 = smov 0  }
  0x14 LB: > { %4418 = sst [smem:[#allocation16_spill]] %s3496_s9  ;;  %s3579_s0 = sadd.s32 4294967295, %s3500_s10   ;;  %s3500_s10 = sphi %s3564_s10, %s4452_s10   ;;  %s3496_s9 = sphi %s3562_s9, %s4449_s9   ;;  %s3492_s8 = sphi %s3560_s8, %s4451_s8   ;;  %s3488_s7 = sphi %s3558_s7, %s4450_s7  }
  0x15   : > { %s2106_s11 = sadd.s32 4294967294, %s3500_s10   ;;  %p49_p3 = scmp.ne.s32.totalorder %s3492_s8, %s3488_s7 }
  0x16   : > { %p4400_p4 = scmp.eq.s32.totalorder %s3579_s0, 0  ;;  %p182_p6 = scmp.eq.s32.totalorder %s2106_s11, 2 }
  0x17   : > { %p2107_p8 = scmp.ge.s32.totalorder %s3500_s10, 1  ;;  %p189_p10 = scmp.lt.s32.totalorder %s3500_s10, 4 }
  0x18   : > { %p3588_p7 = por %p4400_p4, %p49_p3  ;;  %p3593_p9 = por %p182_p6, %p49_p3 }
  0x19   : > { %p3598_p11 = pnand %p2107_p8, %p189_p10  ;;  %s3503_s15 = smov [#allocation9]  }
  0x1a   : > { %s4419_s12 = scalar_select %p3588_p7, 1, 0 }
  0x1b   : > { %s4420_s13 = scalar_select %p3593_p9, 1, 0 }
  0x1c   : > { %s4421_s14 = scalar_select %p3598_p11, 1, 0 }
  0x1d   : > { %s201_s16 = sshll.u32 %s3503_s15, 4  ;;  %p3261_p12 = pneg %p3598_p11  ;;  %s202_s16 = int_to_ptr.vmem [resolvable:$true] %s201_s16 }
  0x1e   : > { %s3611_s18 = sadd.s32 1, %s3500_s10   ;;  %s36_s19 = sadd.s32 1, %s3496_s9 }
  0x1f   : > { %p3606_p13 = pnand %p3261_p12, %p4400_p4  ;;  %s33_s20 = ssub.s32 %s3500_s10, %s3611_s18 }
  0x20   : > { %s4423_s5 = sld [smem:[#allocation23_spill]] }
  0x21   : > { %p3338_p1 = pneg %p3606_p13 }
  0x26   : > { %s3336_s23 = scalar_lea.hbm %s4423_s5, 2048 }
  0x27   : > { %p3337_p0 = scmp.ne.s32.totalorder %s4423_s5, %s3336_s23  ;;  %p3343_p6 = scmp.lt.u32.totalorder %s3336_s23, %s4423_s5 }
  0x29   : > { %p3339_p2 = pnand %p3338_p1, %p3337_p0 }
  0x2b   : > { %p3340_p3 = pneg %p3339_p2 }
  0x2d   : > { %p3345_p8 = pnand %p3343_p6, %p3340_p3 }
  0x2f   : > { %3348 = shalt.err (!%p3345_p8)
}
  0x30   : > { %s3349_s28 = scalar_lea.vmem %s202_s16, 2048  ;;  %p3357_p5 = scmp.lt.s32.totalorder %s202_s16, %s202_s16 }
  0x31   : > { %p3350_p10 = scmp.ne.s32.totalorder %s202_s16, %s3349_s28  ;;  %p3358_p9 = scmp.lt.s32.totalorder %s3349_s28, %s3349_s28 }
  0x33   : > { %p3352_p12 = pnand %p3350_p10, %p3338_p1  ;;  %p3359_p7 = por %p3358_p9, %p3357_p5 }
  0x35   : > { %p3353_p4 = pneg %p3352_p12 }
  0x37   : > { %p3360_p11 = pnand %p3359_p7, %p3353_p4 }
  0x39   : > { %3363 = shalt.err (!%p3360_p11)
}
  0x3a   : > { %s4403_s29 = smov 128   ;;  %s4405_s30 = smov 8  }
  0x3b   : > { %3264 = dma.hbm_to_vmem [thread:$0]  (!%p3606_p13), %s4423_s5, 2048, %s202_s16, [#allocation8], %s4403_s29, %s4403_s29, %s4405_s30  }
  0x3c   : > { %p34_p4 = scmp.eq.s32.totalorder %s33_s20, 0  ;;  %p43_p5 = scmp.ne.s32.totalorder %s3496_s9, %s3492_s8 }
  0x3d   : > { %p44_p7 = scmp.eq.s32.totalorder %s3500_s10, 0  ;;  %p3277_p9 = scmp.lt.s32.totalorder %s3500_s10, 3 }
  0x3e   : > { %s3640_s21 = scalar_select %p34_p4, %s3496_s9, %s36_s19  }
  0x3f   : > { %p45_p11 = por %p44_p7, %p43_p5  ;;  %p4425_p0 = scmp.eq.s32.totalorder %s3579_s0, 2 }
  0x40   : > { %4424 = sst [smem:[#allocation17_spill]] %s3640_s21  ;;  %s215_s17 = sand.u32 1, %s3496_s9  }
  0x41   : > { %p3644_p1 = por %p4425_p0, %p43_p5  ;;  %s2128_s23 = sshll.u32 %s3500_s10, 9 }
  0x42   : > { %s3650_s24 = sshll.u32 %s215_s17, 5  ;;  %s4427_s1 = sld [smem:[#allocation22_spill]] }
  0x43   : > { %s219_s19 = scalar_lea.vmem [#allocation4], %s3650_s24  ;;  %p3658_p13 = pnand %p3277_p9, %p45_p11 }
  0x44   : > { %s226_s20 = sshll.u32 %s219_s19, 4  ;;  %s3667_s15 = scalar_lea.hbm %s4395_s2, %s2128_s23  ;;  %s3662_s20 = int_to_ptr.vmem [resolvable:$true] %s226_s20 }
  0x45   : > { %s3669_s25 = scalar_lea.sflag [#allocation5], %s215_s17  ;;  %p3366_p3 = pneg %p3658_p13 }
  0x48   : > { %s3655_s16 = scalar_lea.hbm %s4427_s1, %s2128_s23  ;;  %s3369_s30 = scalar_lea.hbm %s4427_s1, 1536 }
  0x49   : > { %s3364_s26 = scalar_lea.hbm %s3655_s16, 512  ;;  %p3370_p10 = scmp.lt.u32.totalorder %s3655_s16, %s4427_s1 }
  0x4a   : > { %p3365_p2 = scmp.ne.s32.totalorder %s3655_s16, %s3364_s26  ;;  %p3371_p12 = scmp.lt.u32.totalorder %s3369_s30, %s3364_s26 }
  0x4b   : > { %p3373_p5 = scmp.lt.u32.totalorder %s3364_s26, %s3655_s16 }
  0x4c   : > { %p3367_p6 = pnand %p3366_p3, %p3365_p2  ;;  %p3372_p4 = por %p3371_p12, %p3370_p10 }
  0x4e   : > { %p3368_p8 = pneg %p3367_p6  ;;  %p3374_p7 = por %p3373_p5, %p3372_p4 }
  0x50   : > { %p3375_p9 = pnand %p3374_p7, %p3368_p8 }
  0x52   : > { %3378 = shalt.err (!%p3375_p9)
}
  0x53   : > { %s3379_s17 = scalar_lea.vmem %s3662_s20, 512  ;;  %s3506_s29 = smov [#allocation4]  }
  0x54   : > { %p3380_p11 = scmp.ne.s32.totalorder %s3662_s20, %s3379_s17  ;;  %s3384_s23 = sshll.u32 %s3506_s29, 4  ;;  %s3385_s23 = int_to_ptr.vmem [resolvable:$false] %s3384_s23 }
  0x55   : > { %s3386_s5 = scalar_lea.vmem %s3385_s23, 1024  ;;  %p3387_p6 = scmp.lt.s32.totalorder %s3662_s20, %s3385_s23 }
  0x56   : > { %p3382_p0 = pnand %p3380_p11, %p3366_p3  ;;  %p3388_p10 = scmp.lt.s32.totalorder %s3386_s5, %s3379_s17 }
  0x58   : > { %p3383_p2 = pneg %p3382_p0  ;;  %p3389_p12 = por %p3388_p10, %p3387_p6 }
  0x5a   : > { %p3390_p4 = pnand %p3389_p12, %p3383_p2 }
  0x5c   : > { %3393 = shalt.err (!%p3390_p4)
}
  0x5d   : > { %s4429_s30 = smov 8   ;;  %s4430_s21 = smov 128  }
  0x5e   : > { %3268 = dma.hbm_to_vmem [thread:$0]  (!%p3658_p13), %s3655_s16, 512, %s3662_s20, %s3669_s25, %s4430_s21, %s4430_s21, %s4429_s30  }
  0x5f   : > { %s240_s28 = scalar_lea.vmem [#allocation7], %s3650_s24  ;;  %s236_s26 = sand.u32 1, %s3500_s10  }
  0x60   : > { %s247_s11 = sshll.u32 %s240_s28, 4  ;;  %s3704_s19 = scalar_lea.sflag [#allocation8], %s236_s26  ;;  %s3702_s11 = int_to_ptr.vmem [resolvable:$true] %s247_s11 }
  0x61   : > { %s3394_s17 = scalar_lea.hbm %s3667_s15, 512  ;;  %s3399_s5 = scalar_lea.hbm %s4395_s2, 1536 }
  0x62   : > { %p3395_p8 = scmp.ne.s32.totalorder %s3667_s15, %s3394_s17  ;;  %p3400_p9 = scmp.lt.u32.totalorder %s3667_s15, %s4395_s2 }
  0x63   : > { %p3401_p11 = scmp.lt.u32.totalorder %s3399_s5, %s3394_s17  ;;  %p3403_p2 = scmp.lt.u32.totalorder %s3394_s17, %s3667_s15 }
  0x64   : > { %p3397_p5 = pnand %p3395_p8, %p3366_p3 }
  0x65   : > { %p3402_p0 = por %p3401_p11, %p3400_p9 }
  0x66   : > { %p3398_p7 = pneg %p3397_p5 }
  0x67   : > { %p3404_p6 = por %p3403_p2, %p3402_p0 }
  0x69   : > { %p3405_p10 = pnand %p3404_p6, %p3398_p7 }
  0x6b   : > { %3408 = shalt.err (!%p3405_p10)
}
  0x6c   : > { %s3409_s24 = scalar_lea.vmem %s3702_s11, 512  ;;  %s3507_s16 = smov [#allocation7]  }
  0x6d   : > { %p3410_p12 = scmp.ne.s32.totalorder %s3702_s11, %s3409_s24  ;;  %s3414_s20 = sshll.u32 %s3507_s16, 4  ;;  %s3415_s20 = int_to_ptr.vmem [resolvable:$false] %s3414_s20 }
  0x6e   : > { %s3416_s1 = scalar_lea.vmem %s3415_s20, 1024  ;;  %p3417_p5 = scmp.lt.s32.totalorder %s3702_s11, %s3415_s20 }
  0x6f   : > { %p3412_p4 = pnand %p3410_p12, %p3366_p3  ;;  %p3418_p9 = scmp.lt.s32.totalorder %s3416_s1, %s3409_s24 }
  0x71   : > { %p3413_p8 = pneg %p3412_p4  ;;  %p3419_p11 = por %p3418_p9, %p3417_p5 }
  0x73   : > { %p3420_p0 = pnand %p3419_p11, %p3413_p8 }
  0x75   : > { %3423 = shalt.err (!%p3420_p0)
}
  0x76   : > { %3271 = dma.hbm_to_vmem [thread:$0]  (!%p3658_p13), %s3667_s15, 512, %s3702_s11, %s3704_s19, %s4430_s21, %s4430_s21, %s4429_s30  }
  0x77   : > { %p4431_p3 = scmp.ne.s32.totalorder %s4421_s14, 0 }
  0x79   : > { %275 = sbr.rel (%p4431_p3) target bundleno = 978 (0x3d2), region = 40 }
  0x80   : > { %s3736_s9 = sand.u32 1, %s3492_s8   ;;  %p4432_p7 = scmp.ne.s32.totalorder %s4419_s12, 0 }
  0x81   : > { %s3739_s25 = sshll.u32 %s3736_s9, 5  ;;  %s278_s27 = scalar_lea.sflag [#allocation5], %s3736_s9 }
  0x82   : > { %s3743_s28 = scalar_lea.vmem [#allocation4], %s3739_s25 }
  0x83   : > { %3471 = dma.done.wait (%p4432_p7), %s278_s27, 512  }
  0x84   : > { %3473 = vsyncadd (%p4432_p7), %s278_s27, 4294966784  ;;  %s286_s14 = sand.u32 1, %s3579_s0   ;;  %s3751_s30 = scalar_lea.vmem [#allocation7], %s3739_s25 }
  0x85   : > { %s287_s15 = scalar_lea.sflag [#allocation8], %s286_s14 }
  0x86   : > { %3475 = dma.done.wait (%p4432_p7), %s287_s15, 512  }
  0x87   : > { %3477 = vsyncadd (%p4432_p7), %s287_s15, 4294966784  ;;  %p4433_p13 = scmp.eq.s32.totalorder %s3579_s0, 0 }
  0x89   : > { %3479 = dma.done.wait (%p4433_p13), [#allocation8], 2048   ;;  %p4434_p2 = pmov %p4433_p13 }
  0x8a   : > { %v359_v0 = vld [vmem:[#allocation9] sm:$0xff]  ;;  %v360_v1 = vld [vmem:[#allocation9 + $0x8] sm:$0xff]  ;;  %v361_v2 = vld [vmem:[#allocation9 + $0x10] sm:$0xff]  ;;  %s336_s12 = sld [smem:[#allocation3 + %s3579_s0]]  ;;  %s2130_s5 = sshll.u32 %s3579_s0, 9 }
  0x8b   : > { %3481 = vsyncadd (%p4434_p2), [#allocation8], 4294965248  ;;  %v376_v3 = vand.u32 4294901760, %v359_v0  ;;  %v379_v4 = vand.u32 4294901760, %v360_v1  ;;  %v362_v5 = vld [vmem:[#allocation9 + $0x18] sm:$0xff]  ;;  %v382_v6 = vand.u32 4294901760, %v361_v2  ;;  %s4348_s27 = scalar_lea.hbm %s4399_s6, %s2130_s5 }
  0x8c   : > { %v363_v7 = vld [vmem:[#allocation9 + $0x20] sm:$0xff]  ;;  %v364_v8 = vld [vmem:[#allocation9 + $0x28] sm:$0xff]  ;;  %v385_v9 = vand.u32 4294901760, %v362_v5  ;;  %v3765_v14 = vld [vmem:[#allocation9 + $0x30] sm:$0xff]  ;;  %s341_s21 = sld [smem:[#allocation3 + %s3579_s0]]  ;;  %s333_s24 = scalar_lea.vmem [#allocation10], %s3739_s25 }
  0x8d   : > { %v3761_v10 = vpack.c.bf16 %v379_v4, %v376_v3  ;;  %v388_v11 = vand.u32 4294901760, %v363_v7  ;;  %v391_v12 = vand.u32 4294901760, %v364_v8  ;;  %v3767_v15 = vld [vmem:[#allocation9 + $0x38] sm:$0xff]  ;;  %v347_v16 = vld [vmem:[%s3743_s28] sm:$0xff]  ;;  %v348_v19 = vld [vmem:[%s3743_s28 + $0x8] sm:$0xff]  ;;  %v394_v22 = vand.u32 4294901760, %v3765_v14 }
  0x8e   : > { %v3763_v13 = vpack.c.bf16 %v385_v9, %v382_v6  ;;  %v351_v17 = vld [vmem:[%s3751_s30] sm:$0xff]  ;;  %v352_v20 = vld [vmem:[%s3751_s30 + $0x8] sm:$0xff]  ;;  %v397_v23 = vand.u32 4294901760, %v3767_v15  ;;  %v3786_v25 = vsub.f32 %v359_v0, %v376_v3  ;;  %v3793_v28 = vsub.f32 %v360_v1, %v379_v4  ;;  %v3813_v34 = vld [vmem:[#allocation9 + $0x50] sm:$0xff]  ;;  %s1983_s16 = sshll.u32 %s333_s24, 4  ;;  %s1970_s0 = scalar_lea.sflag [#allocation6], %s3736_s9  ;;  %s4350_s16 = int_to_ptr.vmem [resolvable:$true] %s1983_s16 }
  0x8f   : > { %2828 = vmatprep.subr.bf16.mxu0 %v3761_v10  ;;  %3020 = vmatprep.subr.bf16.mxu1 %v3761_v10  ;;  %v3774_v18 = vadd.f32 %v351_v17, %v347_v16  ;;  %v3780_v21 = vpack.c.bf16 %v391_v12, %v388_v11  ;;  %v3784_v24 = vld [vmem:[#allocation9 + $0x40] sm:$0xff]  ;;  %v3788_v26 = vld [vmem:[#allocation9 + $0x48] sm:$0xff]  ;;  %v3796_v29 = vadd.f32 %v352_v20, %v348_v19  ;;  %v3815_v35 = vld [vmem:[#allocation9 + $0x58] sm:$0xff]  ;;  %v406_v43 = vand.u32 4294901760, %v3813_v34  ;;  %s3424_s25 = scalar_lea.vmem %s4350_s16, 512 }
  0x90   : > { %2830 = vmatpush3.bf16.msra.mxu0 %v3761_v10  ;;  %3022 = vmatpush3.bf16.msra.mxu1 %v3761_v10  ;;  %v400_v30 = vand.u32 4294901760, %v3784_v24  ;;  %v3810_v32 = vpack.c.bf16 %v397_v23, %v394_v22  ;;  %v403_v33 = vand.u32 4294901760, %v3788_v26  ;;  %v499_v36 = vand.u32 4294901760, %v3786_v25  ;;  %v371_v47 = vld [vmem:[#allocation9 + $0x60] sm:$0xff]  ;;  %v372_v48 = vld [vmem:[#allocation9 + $0x68] sm:$0xff]  ;;  %v373_v49 = vld [vmem:[#allocation9 + $0x70] sm:$0xff]  ;;  %p3425_p12 = scmp.ne.s32.totalorder %s4350_s16, %s3424_s25 }
  0x91   : > { %4435 = vst [vmem:[#allocation18_spill] sm:$0xff] %v3774_v18  ;;  %2832 = vmatprep.subr.bf16.mxu0 %v3763_v13  ;;  %v3791_v27 = vand.u32 4294901760, %v3774_v18  ;;  %3024 = vmatprep.subr.bf16.mxu1 %v3763_v13  ;;  %4436 = vst [vmem:[#allocation19_spill] sm:$0xff] %v3796_v29  ;;  %v3818_v37 = vsub.f32 %v361_v2, %v382_v6  ;;  %v506_v39 = vand.u32 4294901760, %v3793_v28  ;;  %v3828_v42 = vand.u32 4294901760, %v3796_v29  ;;  %v3851_v53 = vld [vmem:[#allocation9 + $0x78] sm:$0xff] }
  0x92   : > { %v3823_v40 = vsub.f32 %v362_v5, %v385_v9  ;;  %v3825_v41 = vsub.f32 %v363_v7, %v388_v11  ;;  %v409_v44 = vand.u32 4294901760, %v3815_v35  ;;  %v3842_v46 = vpack.c.bf16 %v403_v33, %v400_v30  ;;  %v349_v6 = vld [vmem:[%s3743_s28 + $0x10] sm:$0xff]  ;;  %v350_v19 = vld [vmem:[%s3743_s28 + $0x18] sm:$0xff]  ;;  %p337_p6 = scmp.lt.s32.totalorder %s336_s12, 2  ;;  %p342_p10 = scmp.lt.s32.totalorder %s341_s21, 2 }
  0x93   : > { %v3802_v31 = vsub.f32 %v3774_v18, %v3791_v27  ;;  %v500_v50 = vsub.f32 %v3786_v25, %v499_v36  ;;  %v513_v51 = vand.u32 4294901760, %v3818_v37  ;;  %v3848_v52 = vsub.f32 %v364_v8, %v391_v12  ;;  %v353_v7 = vld [vmem:[%s3751_s30 + $0x10] sm:$0xff]  ;;  %v354_v20 = vld [vmem:[%s3751_s30 + $0x18] sm:$0xff]  ;;  %p3426_p4 = pnand %p3425_p12, %p3644_p1  ;;  %s3508_s28 = smov [#allocation10]  }
  0x94   : > { %2834 = vmatpush3.bf16.msra.mxu0 %v3763_v13  ;;  %3026 = vmatpush3.bf16.msra.mxu1 %v3763_v13  ;;  %v507_v55 = vsub.f32 %v3793_v28, %v506_v39  ;;  %v520_v56 = vand.u32 4294901760, %v3823_v40  ;;  %v527_v57 = vand.u32 4294901760, %v3825_v41  ;;  %v3860_v58 = vsub.f32 %v3796_v29, %v3828_v42  ;;  %s4454_s12 = smov (!%p337_p6, %s336_s12), 2  ;;  %s4456_s21 = smov (!%p342_p10, %s341_s21), 2 }
  0x95   : > { %2836 = vmatprep.subr.bf16.mxu0 %v3780_v21  ;;  %3028 = vmatprep.subr.bf16.mxu1 %v3780_v21  ;;  %v4410_v38 = vand.u32 4294901760, %v3802_v31  ;;  %v412_v59 = vand.u32 4294901760, %v371_v47  ;;  %v415_v60 = vand.u32 4294901760, %v372_v48  ;;  %v418_v61 = vand.u32 4294901760, %v373_v49  ;;  %s339_s19 = scalar_lea.vmem %s4396_s3, %s4454_s12  ;;  %s344_s23 = scalar_lea.vmem %s4397_s4, %s4456_s21 }
  0x96   : > { %v3864_v62 = vpack.c.bf16 %v409_v44, %v406_v43  ;;  %v421_v63 = vand.u32 4294901760, %v3851_v53  ;;  %v514_v0 = vsub.f32 %v3818_v37, %v513_v51  ;;  %v534_v1 = vand.u32 4294901760, %v3848_v52  ;;  %p3427_p8 = pneg %p3426_p4  ;;  %s3428_s14 = sshll.u32 %s3508_s28, 4  ;;  %s3429_s14 = int_to_ptr.vmem [resolvable:$false] %s3428_s14 }
  0x97   : > { %v459_v45 = vsub.f32 %v3802_v31, %v4410_v38  ;;  %v501_v2 = vand.u32 4294901760, %v500_v50  ;;  %v508_v3 = vand.u32 4294901760, %v507_v55  ;;  %v521_v4 = vsub.f32 %v3823_v40, %v520_v56  ;;  %s3430_s15 = scalar_lea.vmem %s3429_s14, 1024  ;;  %p3431_p5 = scmp.lt.s32.totalorder %s4350_s16, %s3429_s14 }
  0x98   : > { %2838 = vmatpush3.bf16.msra.mxu0 %v3780_v21  ;;  %3030 = vmatpush3.bf16.msra.mxu1 %v3780_v21  ;;  %v3878_v5 = vsub.f32 %v3825_v41, %v527_v57  ;;  %v4409_v8 = vand.u32 4294901760, %v3860_v58  ;;  %v3885_v9 = vpack.c.bf16 %v415_v60, %v412_v59  ;;  %v3888_v11 = vpack.c.bf16 %v421_v63, %v418_v61  ;;  %p3432_p9 = scmp.lt.s32.totalorder %s3430_s15, %s3424_s25 }
  0x99   : > { %2840 = vmatprep.subr.bf16.mxu0 %v3810_v32  ;;  %3032 = vmatprep.subr.bf16.mxu1 %v3810_v32  ;;  %v460_v54 = vand.u32 4294901760, %v459_v45  ;;  %v515_v12 = vand.u32 4294901760, %v514_v0  ;;  %v3893_v16 = vsub.f32 %v3848_v52, %v534_v1  ;;  %v3895_v17 = vadd.f32 %v353_v7, %v349_v6 }
  0x9a   : > { %v3900_v45 = vpack.c.bf16 %v508_v3, %v501_v2  ;;  %v522_v50 = vand.u32 4294901760, %v521_v4  ;;  %v3906_v55 = vsub.f32 %v3765_v14, %v394_v22  ;;  %v469_v0 = vsub.f32 %v3860_v58, %v4409_v8  ;;  %p3433_p11 = por %p3432_p9, %p3431_p5 }
  0x9b   : > { %2403 = vmatprep.mubr.f32.mxu0 %v460_v54  ;;  %4437 = vst [vmem:[#allocation20_spill] sm:$0xff] %v3895_v17  ;;  %v529_v54 = vand.u32 4294901760, %v3878_v5  ;;  %v3915_v6 = vsub.f32 %v3767_v15, %v397_v23  ;;  %v3920_v2 = vsub.f32 %v3784_v24, %v400_v30  ;;  %v3923_v3 = vand.u32 4294901760, %v3895_v17 }
  0x9c   : > { %2842 = vmatpush3.bf16.msra.mxu0 %v3810_v32  ;;  %3034 = vmatpush3.bf16.msra.mxu1 %v3810_v32  ;;  %v3929_v14 = vsub.f32 %v3788_v26, %v403_v33  ;;  %v3932_v22 = vsub.f32 %v3813_v34, %v406_v43  ;;  %v3935_v15 = vsub.f32 %v3815_v35, %v409_v44  ;;  %v536_v24 = vand.u32 4294901760, %v3893_v16  ;;  %p3434_p0 = pnand %p3433_p11, %p3427_p8 }
  0x9d   : > { %2844 = vmatprep.subr.bf16.mxu0 %v3842_v46  ;;  %3036 = vmatprep.subr.bf16.mxu1 %v3842_v46  ;;  %v3937_v23 = vadd.f32 %v354_v20, %v350_v19  ;;  %v3941_v30 = vsub.f32 %v371_v47, %v412_v59  ;;  %v3943_v4 = vsub.f32 %v372_v48, %v415_v60  ;;  %v541_v34 = vand.u32 4294901760, %v3906_v55 }
  0x9e   : > { %v3947_v26 = vsub.f32 %v3895_v17, %v3923_v3  ;;  %v3950_v33 = vpack.c.bf16 %v522_v50, %v515_v12  ;;  %v3953_v35 = vsub.f32 %v373_v49, %v418_v61  ;;  %v470_v44 = vand.u32 4294901760, %v469_v0 }
  0x9f   : > { %4438 = vst [vmem:[#allocation21_spill] sm:$0xff] %v3937_v23  ;;  %v3956_v43 = vand.u32 4294901760, %v3937_v23  ;;  %v548_v47 = vand.u32 4294901760, %v3915_v6  ;;  %v3962_v59 = vsub.f32 %v3851_v53, %v421_v63  ;;  %v555_v60 = vand.u32 4294901760, %v3920_v2 }
  0xa0   : > { %2846 = vmatpush3.bf16.msra.mxu0 %v3842_v46  ;;  %3038 = vmatpush3.bf16.msra.mxu1 %v3842_v46  ;;  %v4408_v48 = vand.u32 4294901760, %v3947_v26  ;;  %v562_v49 = vand.u32 4294901760, %v3929_v14  ;;  %v569_v61 = vand.u32 4294901760, %v3932_v22  ;;  %v576_v7 = vand.u32 4294901760, %v3935_v15 }
  0xa1   : > { %2848 = vmatprep.subr.bf16.mxu0 %v3864_v62  ;;  %3040 = vmatprep.subr.bf16.mxu1 %v3864_v62  ;;  %v3970_v5 = vsub.f32 %v3937_v23, %v3956_v43  ;;  %v583_v12 = vand.u32 4294901760, %v3941_v30  ;;  %v590_v53 = vand.u32 4294901760, %v3943_v4  ;;  %v597_v16 = vand.u32 4294901760, %v3953_v35 }
  0xa2   : > { %v479_v63 = vsub.f32 %v3947_v26, %v4408_v48  ;;  %v3986_v20 = vpack.c.bf16 %v506_v39, %v499_v36  ;;  %v3992_v50 = vpack.c.bf16 %v520_v56, %v513_v51  ;;  %v604_v0 = vand.u32 4294901760, %v3962_v59 }
  0xa3   : > { %v4412_v19 = vand.u32 4294901760, %v3970_v5  ;;  %v4000_v48 = vpack.c.bf16 %v534_v1, %v527_v57  ;;  %v4002_v8 = vpack.c.bf16 %v548_v47, %v541_v34  ;;  %v4004_v36 = vpack.c.bf16 %v562_v49, %v555_v60 }
  0xa4   : > { %2850 = vmatpush3.bf16.msra.mxu0 %v3864_v62  ;;  %3042 = vmatpush3.bf16.msra.mxu1 %v3864_v62  ;;  %v480_v39 = vand.u32 4294901760, %v479_v63  ;;  %v4010_v56 = vpack.c.bf16 %v576_v7, %v569_v61  ;;  %v4012_v38 = vpack.c.bf16 %v590_v53, %v583_v12  ;;  %v542_v57 = vsub.f32 %v3906_v55, %v541_v34 }
  0xa5   : > { %2852 = vmatprep.subr.bf16.mxu0 %v3885_v9  ;;  %3044 = vmatprep.subr.bf16.mxu1 %v3885_v9  ;;  %v489_v51 = vsub.f32 %v3970_v5, %v4412_v19  ;;  %v549_v1 = vsub.f32 %v3915_v6, %v548_v47  ;;  %v4017_v17 = vpack.c.bf16 %v604_v0, %v597_v16 }
  0xa6   : > { %v4022_v19 = vpack.c.bf16 %v536_v24, %v529_v54  ;;  %v543_v23 = vand.u32 4294901760, %v542_v57  ;;  %v556_v34 = vsub.f32 %v3920_v2, %v555_v60  ;;  %v563_v47 = vsub.f32 %v3929_v14, %v562_v49 }
  0xa7   : > { %v490_v63 = vand.u32 4294901760, %v489_v51  ;;  %v550_v18 = vand.u32 4294901760, %v549_v1  ;;  %v570_v29 = vsub.f32 %v3932_v22, %v569_v61  ;;  %v584_v60 = vsub.f32 %v3941_v30, %v583_v12 }
  0xa8   : > { %2854 = vmatpush3.bf16.msra.mxu0 %v3885_v9  ;;  %3046 = vmatpush3.bf16.msra.mxu1 %v3885_v9  ;;  %v557_v24 = vand.u32 4294901760, %v556_v34  ;;  %v591_v57 = vsub.f32 %v3943_v4, %v590_v53  ;;  %v598_v1 = vsub.f32 %v3953_v35, %v597_v16  ;;  %v605_v12 = vsub.f32 %v3962_v59, %v604_v0 }
  0xa9   : > { %2856 = vmatprep.subr.bf16.mxu0 %v3888_v11  ;;  %3048 = vmatprep.subr.bf16.mxu1 %v3888_v11  ;;  %v4031_v54 = vpack.c.bf16 %v550_v18, %v543_v23  ;;  %v571_v51 = vand.u32 4294901760, %v570_v29  ;;  %v585_v18 = vand.u32 4294901760, %v584_v60  ;;  %v4058_v16 = vpack.c.bf16 %v3793_v28, %v3786_v25  ;;  %v4446_v60 = vld [vmem:[#allocation20_spill] sm:$0xff] }
  0xaa   : > { %v606_v53 = vand.u32 4294901760, %v605_v12  ;;  %v4064_v0 = vpack.c.bf16 %v3823_v40, %v3818_v37  ;;  %v4072_v25 = vpack.c.bf16 %v3848_v52, %v3825_v41  ;;  %v4080_v28 = vpack.c.bf16 %v3915_v6, %v3906_v55 }
  0xab   : > { %v4086_v37 = vpack.c.bf16 %v3929_v14, %v3920_v2  ;;  %v4092_v40 = vpack.c.bf16 %v3935_v15, %v3932_v22  ;;  %v4098_v41 = vpack.c.bf16 %v3943_v4, %v3941_v30  ;;  %v4104_v52 = vpack.c.bf16 %v3962_v59, %v3953_v35  ;;  %v4444_v4 = vld [vmem:[#allocation18_spill] sm:$0xff] }
  0xac   : > { %2858 = vmatpush3.bf16.msra.mxu0 %v3888_v11  ;;  %3050 = vmatpush3.bf16.msra.mxu1 %v3888_v11  ;;  %v4439_v55 = vand.u32 4294901760, %v3802_v31  ;;  %v4441_v6 = vand.u32 4294901760, %v3947_v26  ;;  %v4442_v2 = vand.u32 4294901760, %v3970_v5 }
  0xad   : > { %2860 = vmatprep.subr.bf16.mxu0 %v3900_v45  ;;  %3052 = vmatprep.subr.bf16.mxu1 %v3900_v45 }
  0xaf   : > { %2404 = vmatmul.mubr.f32.vlgmr.msra.gmra.mrb[0].mxu0 %v470_v44  ;;  %v564_v44 = vand.u32 4294901760, %v563_v47 }
  0xb0   : > { %2862 = vmatpush3.bf16.msra.mxu0 %v3900_v45  ;;  %2406 = vmatprep.mubr.f32.mxu0 %v480_v39  ;;  %v577_v39 = vsub.f32 %v3935_v15, %v576_v7  ;;  %v592_v7 = vand.u32 4294901760, %v591_v57  ;;  %v4443_v15 = vld [vmem:[#allocation19_spill] sm:$0xff] }
  0xb1   : > { %2864 = vmatprep.subr.bf16.mxu0 %v3950_v33  ;;  %v4037_v49 = vpack.c.bf16 %v564_v44, %v557_v24  ;;  %v4445_v24 = vld [vmem:[#allocation21_spill] sm:$0xff] }
  0xb2   : > { %v578_v61 = vand.u32 4294901760, %v577_v39  ;;  %v4048_v29 = vpack.c.bf16 %v592_v7, %v585_v18 }
  0xb3   : > { %2407 = vmatmul.mubr.f32.gmra.mrb[2].mxu0 %v490_v63  ;;  %v599_v63 = vand.u32 4294901760, %v598_v1 }
  0xb4   : > { %2866 = vmatpush3.bf16.msra.mxu0 %v3950_v33  ;;  %2441 = vmatprep.mubr.f32.mxu0 %v3791_v27  ;;  %v4042_v23 = vpack.c.bf16 %v578_v61, %v571_v51 }
  0xb5   : > { %2868 = vmatprep.subr.bf16.mxu0 %v4022_v19  ;;  %v4052_v34 = vpack.c.bf16 %v606_v53, %v599_v63 }
  0xb8   : > { %2870 = vmatpush3.bf16.msra.mxu0 %v4022_v19 }
  0xb9   : > { %2872 = vmatprep.subr.bf16.mxu0 %v4031_v54 }
  0xbc   : > { %2874 = vmatpush3.bf16.msra.mxu0 %v4031_v54 }
  0xbd   : > { %2876 = vmatprep.subr.bf16.mxu0 %v4037_v49 }
  0xc0   : > { %2878 = vmatpush3.bf16.msra.mxu0 %v4037_v49 }
  0xc1   : > { %2880 = vmatprep.subr.bf16.mxu0 %v4042_v23 }
  0xc4   : > { %2882 = vmatpush3.bf16.msra.mxu0 %v4042_v23 }
  0xc5   : > { %2884 = vmatprep.subr.bf16.mxu0 %v4048_v29 }
  0xc8   : > { %2886 = vmatpush3.bf16.msra.mxu0 %v4048_v29 }
  0xc9   : > { %2888 = vmatprep.subr.bf16.mxu0 %v4052_v34 }
  0xcc   : > { %2890 = vmatpush3.bf16.msra.mxu0 %v4052_v34 }
  0xcd   : > { %2892 = vmatprep.subr.bf16.mxu0 %v4058_v16 }
  0xcf   : > { %2442 = vmatmul.mubr.f32.vlgmr.msra.gmra.mrb[0].mxu0 %v3828_v42 }
  0xd0   : > { %2894 = vmatpush3.bf16.msra.mxu0 %v4058_v16  ;;  %2444 = vmatprep.mubr.f32.mxu0 %v3923_v3 }
  0xd1   : > { %2896 = vmatprep.subr.bf16.mxu0 %v4064_v0 }
  0xd3   : > { %2445 = vmatmul.mubr.f32.gmra.mrb[2].mxu0 %v3956_v43 }
  0xd4   : > { %2898 = vmatpush3.bf16.msra.mxu0 %v4064_v0  ;;  %2479 = vmatprep.mubr.f32.mxu0 %v3802_v31  ;;  %v4440_v31 = vand.u32 4294901760, %v3860_v58 }
  0xd5   : > { %2900 = vmatprep.subr.bf16.mxu0 %v4072_v25 }
  0xd8   : > { %2902 = vmatpush3.bf16.msra.mxu0 %v4072_v25 }
  0xd9   : > { %2904 = vmatprep.subr.bf16.mxu0 %v4080_v28 }
  0xdc   : > { %2906 = vmatpush3.bf16.msra.mxu0 %v4080_v28 }
  0xdd   : > { %2908 = vmatprep.subr.bf16.mxu0 %v4086_v37 }
  0xe0   : > { %2910 = vmatpush3.bf16.msra.mxu0 %v4086_v37 }
  0xe1   : > { %2912 = vmatprep.subr.bf16.mxu0 %v4092_v40 }
  0xe4   : > { %2914 = vmatpush3.bf16.msra.mxu0 %v4092_v40 }
  0xe5   : > { %2916 = vmatprep.subr.bf16.mxu0 %v4098_v41 }
  0xe8   : > { %2918 = vmatpush3.bf16.msra.mxu0 %v4098_v41 }
  0xe9   : > { %2920 = vmatprep.subr.bf16.mxu0 %v4104_v52 }
  0xec   : > { %2922 = vmatpush3.bf16.msra.mxu0 %v4104_v52 }
  0xed   : > { %2924 = vmatprep.subr.bf16.mxu0 %v3761_v10 }
  0xef   : > { %2480 = vmatmul.mubr.f32.vlgmr.msra.gmra.mrb[0].mxu0 %v3860_v58 }
  0xf0   : > { %2926 = vmatpush3.bf16.msra.mxu0 %v3761_v10  ;;  %2482 = vmatprep.mubr.f32.mxu0 %v3947_v26 }
  0xf1   : > { %2928 = vmatprep.subr.bf16.mxu0 %v3763_v13 }
  0xf3   : > { %2483 = vmatmul.mubr.f32.gmra.mrb[2].mxu0 %v3970_v5 }
  0xf4   : > { %2930 = vmatpush3.bf16.msra.mxu0 %v3763_v13  ;;  %2517 = vmatprep.mubr.f32.mxu0 %v4439_v55 }
  0xf5   : > { %2932 = vmatprep.subr.bf16.mxu0 %v3780_v21 }
  0xf8   : > { %2934 = vmatpush3.bf16.msra.mxu0 %v3780_v21 }
  0xf9   : > { %2936 = vmatprep.subr.bf16.mxu0 %v3810_v32 }
  0xfc   : > { %2938 = vmatpush3.bf16.msra.mxu0 %v3810_v32 }
  0xfd   : > { %2940 = vmatprep.subr.bf16.mxu0 %v3842_v46 }
 0x100   : > { %2942 = vmatpush3.bf16.msra.mxu0 %v3842_v46 }
 0x101   : > { %2944 = vmatprep.subr.bf16.mxu0 %v3864_v62 }
 0x104   : > { %2946 = vmatpush3.bf16.msra.mxu0 %v3864_v62 }
 0x105   : > { %2948 = vmatprep.subr.bf16.mxu0 %v3885_v9 }
 0x108   : > { %2950 = vmatpush3.bf16.msra.mxu0 %v3885_v9 }
 0x109   : > { %2952 = vmatprep.subr.bf16.mxu0 %v3888_v11 }
 0x10c   : > { %2954 = vmatpush3.bf16.msra.mxu0 %v3888_v11 }
 0x10d   : > { %2956 = vmatprep.subr.bf16.mxu0 %v3986_v20 }
 0x10f   : > { %2518 = vmatmul.mubr.f32.vlgmr.msra.gmra.mrb[0].mxu0 %v4440_v31 }
 0x110   : > { %2958 = vmatpush3.bf16.msra.mxu0 %v3986_v20  ;;  %2520 = vmatprep.mubr.f32.mxu0 %v4441_v6 }
 0x111   : > { %2960 = vmatprep.subr.bf16.mxu0 %v3992_v50 }
 0x113   : > { %2521 = vmatmul.mubr.f32.gmra.mrb[2].mxu0 %v4442_v2 }
 0x114   : > { %2962 = vmatpush3.bf16.msra.mxu0 %v3992_v50  ;;  %2555 = vmatprep.mubr.f32.mxu0 %v3791_v27 }
 0x115   : > { %2964 = vmatprep.subr.bf16.mxu0 %v4000_v48 }
 0x118   : > { %2966 = vmatpush3.bf16.msra.mxu0 %v4000_v48 }
 0x119   : > { %2968 = vmatprep.subr.bf16.mxu0 %v4002_v8 }
 0x11c   : > { %2970 = vmatpush3.bf16.msra.mxu0 %v4002_v8 }
 0x11d   : > { %2972 = vmatprep.subr.bf16.mxu0 %v4004_v36 }
 0x120   : > { %2974 = vmatpush3.bf16.msra.mxu0 %v4004_v36 }
 0x121   : > { %2976 = vmatprep.subr.bf16.mxu0 %v4010_v56 }
 0x124   : > { %2978 = vmatpush3.bf16.msra.mxu0 %v4010_v56 }
 0x125   : > { %2980 = vmatprep.subr.bf16.mxu0 %v4012_v38 }
 0x128   : > { %2982 = vmatpush3.bf16.msra.mxu0 %v4012_v38 }
 0x129   : > { %2984 = vmatprep.subr.bf16.mxu0 %v4017_v17 }
 0x12c   : > { %2986 = vmatpush3.bf16.msra.mxu0 %v4017_v17 }
 0x12d   : > { %2988 = vmatprep.subr.bf16.mxu0 %v3761_v10 }
 0x12f   : > { %2556 = vmatmul.mubr.f32.vlgmr.msra.gmra.mrb[0].mxu0 %v3828_v42 }
 0x130   : > { %2990 = vmatpush3.bf16.msra.mxu0 %v3761_v10  ;;  %2558 = vmatprep.mubr.f32.mxu0 %v3923_v3 }
 0x131   : > { %2992 = vmatprep.subr.bf16.mxu0 %v3763_v13 }
 0x133   : > { %2559 = vmatmul.mubr.f32.gmra.mrb[2].mxu0 %v3956_v43 }
 0x134   : > { %2994 = vmatpush3.bf16.msra.mxu0 %v3763_v13  ;;  %2593 = vmatprep.mubr.f32.mxu0 %v3791_v27 }
 0x135   : > { %2996 = vmatprep.subr.bf16.mxu0 %v3780_v21 }
 0x138   : > { %2998 = vmatpush3.bf16.msra.mxu0 %v3780_v21 }
 0x139   : > { %3000 = vmatprep.subr.bf16.mxu0 %v3810_v32 }
 0x13c   : > { %3002 = vmatpush3.bf16.msra.mxu0 %v3810_v32 }
 0x13d   : > { %3004 = vmatprep.subr.bf16.mxu0 %v3842_v46 }
 0x140   : > { %3006 = vmatpush3.bf16.msra.mxu0 %v3842_v46 }
 0x141   : > { %3008 = vmatprep.subr.bf16.mxu0 %v3864_v62 }
 0x144   : > { %3010 = vmatpush3.bf16.msra.mxu0 %v3864_v62 }
 0x145   : > { %3012 = vmatprep.subr.bf16.mxu0 %v3885_v9 }
 0x148   : > { %3014 = vmatpush3.bf16.msra.mxu0 %v3885_v9 }
 0x149   : > { %3016 = vmatprep.subr.bf16.mxu0 %v3888_v11 }
 0x14c   : > { %3018 = vmatpush3.bf16.msra.mxu0 %v3888_v11 }
 0x14f   : > { %2594 = vmatmul.mubr.f32.vlgmr.msra.gmra.mrb[0].mxu0 %v3828_v42 }
 0x150   : > { %2596 = vmatprep.mubr.f32.mxu0 %v3923_v3 }
 0x153   : > { %2597 = vmatmul.mubr.f32.gmra.mrb[2].mxu0 %v3956_v43 }
 0x222   : > { %v2595_v27 = vpop.f32.mrb[0].mxu0 }
 0x223   : > { %v1146_v58 = vmul.f32 0.03125, %v2595_v27  ;;  %v1123_v14 = vpop.f32.mrb[1].mxu0 }
 0x224   : > { %v1145_v22 = vmul.f32 0.03125, %v1123_v14 }
 0x225   : > { %v4177_v30 = vsub.f32 %v4443_v15, %v1146_v58 }
 0x226   : > { %v4180_v26 = vsub.f32 %v4444_v4, %v1145_v22  ;;  %v2598_v35 = vpop.f32.mrb[2].mxu0 }
 0x227   : > { %v1154_v59 = vmul.f32 %v4177_v30, %v4177_v30  ;;  %v1148_v5 = vmul.f32 0.03125, %v2598_v35  ;;  %v1135_v42 = vpop.f32.mrb[3].mxu0 }
 0x228   : > { %v1153_v3 = vmul.f32 %v4180_v26, %v4180_v26  ;;  %v1147_v43 = vmul.f32 0.03125, %v1135_v42 }
 0x229   : > { %v4186_v47 = vand.u32 4294901760, %v1154_v59  ;;  %v4189_v44 = vsub.f32 %v4445_v24, %v1148_v5 }
 0x22a   : > { %v4191_v39 = vand.u32 4294901760, %v1153_v3  ;;  %v4194_v51 = vsub.f32 %v4446_v60, %v1147_v43 }
 0x22b   : > { %v4197_v61 = vsub.f32 %v1154_v59, %v4186_v47  ;;  %v1156_v57 = vmul.f32 %v4189_v44, %v4189_v44 }
 0x22c   : > { %v1155_v18 = vmul.f32 %v4194_v51, %v4194_v51  ;;  %v4204_v7 = vsub.f32 %v1153_v3, %v4191_v39 }
 0x22d   : > { %v4206_v1 = vand.u32 4294901760, %v1156_v57  ;;  %v1250_v12 = vand.u32 4294901760, %v4197_v61 }
 0x22e   : > { %v4209_v63 = vand.u32 4294901760, %v1155_v18  ;;  %v1240_v53 = vand.u32 4294901760, %v4204_v7 }
 0x22f   : > { %v4213_v55 = vsub.f32 %v1156_v57, %v4206_v1  ;;  %v1251_v31 = vsub.f32 %v4197_v61, %v1250_v12 }
 0x230   : > { %v4219_v6 = vsub.f32 %v1155_v18, %v4209_v63  ;;  %v1241_v2 = vsub.f32 %v4204_v7, %v1240_v53 }
 0x231   : > { %v1270_v27 = vand.u32 4294901760, %v4213_v55  ;;  %v1252_v22 = vand.u32 4294901760, %v1251_v31 }
 0x232   : > { %v1242_v58 = vand.u32 4294901760, %v1241_v2  ;;  %v1260_v14 = vand.u32 4294901760, %v4219_v6 }
 0x233   : > { %v1271_v15 = vsub.f32 %v4213_v55, %v1270_v27 }
 0x234   : > { %2631 = vmatprep.mubr.f32.mxu1 %v1242_v58  ;;  %v1261_v4 = vsub.f32 %v4219_v6, %v1260_v14 }
 0x235   : > { %2632 = vmatmul.mubr.f32.vlgmr.msra.gmra.mrb[0].mxu1 %v1252_v22  ;;  %v1272_v59 = vand.u32 4294901760, %v1271_v15 }
 0x236   : > { %3054 = vmatpush3.bf16.msra.mxu1 %v3900_v45  ;;  %v1262_v35 = vand.u32 4294901760, %v1261_v4 }
 0x237   : > { %3056 = vmatprep.subr.bf16.mxu1 %v3950_v33 }
 0x238   : > { %2634 = vmatprep.mubr.f32.mxu1 %v1262_v35 }
 0x239   : > { %2635 = vmatmul.mubr.f32.gmra.mrb[2].mxu1 %v1272_v59 }
 0x23a   : > { %3058 = vmatpush3.bf16.msra.mxu1 %v3950_v33  ;;  %2669 = vmatprep.mubr.f32.mxu1 %v4191_v39 }
 0x23b   : > { %3060 = vmatprep.subr.bf16.mxu1 %v4022_v19 }
 0x23e   : > { %3062 = vmatpush3.bf16.msra.mxu1 %v4022_v19 }
 0x23f   : > { %3064 = vmatprep.subr.bf16.mxu1 %v4031_v54 }
 0x242   : > { %3066 = vmatpush3.bf16.msra.mxu1 %v4031_v54 }
 0x243   : > { %3068 = vmatprep.subr.bf16.mxu1 %v4037_v49 }
 0x246   : > { %3070 = vmatpush3.bf16.msra.mxu1 %v4037_v49 }
 0x247   : > { %3072 = vmatprep.subr.bf16.mxu1 %v4042_v23 }
 0x24a   : > { %3074 = vmatpush3.bf16.msra.mxu1 %v4042_v23 }
 0x24b   : > { %3076 = vmatprep.subr.bf16.mxu1 %v4048_v29 }
 0x24e   : > { %3078 = vmatpush3.bf16.msra.mxu1 %v4048_v29 }
 0x24f   : > { %3080 = vmatprep.subr.bf16.mxu1 %v4052_v34 }
 0x252   : > { %3082 = vmatpush3.bf16.msra.mxu1 %v4052_v34 }
 0x253   : > { %3084 = vmatprep.subr.bf16.mxu1 %v4058_v16 }
 0x255   : > { %2670 = vmatmul.mubr.f32.vlgmr.msra.gmra.mrb[0].mxu1 %v4186_v47 }
 0x256   : > { %2672 = vmatprep.mubr.f32.mxu1 %v4209_v63  ;;  %3086 = vmatpush3.bf16.msra.mxu1 %v4058_v16 }
 0x257   : > { %3088 = vmatprep.subr.bf16.mxu1 %v4064_v0 }
 0x259   : > { %2673 = vmatmul.mubr.f32.gmra.mrb[2].mxu1 %v4206_v1 }
 0x25a   : > { %3090 = vmatpush3.bf16.msra.mxu1 %v4064_v0  ;;  %2707 = vmatprep.mubr.f32.mxu1 %v4204_v7 }
 0x25b   : > { %3092 = vmatprep.subr.bf16.mxu1 %v4072_v25 }
 0x25e   : > { %3094 = vmatpush3.bf16.msra.mxu1 %v4072_v25 }
 0x25f   : > { %3096 = vmatprep.subr.bf16.mxu1 %v4080_v28 }
 0x262   : > { %3098 = vmatpush3.bf16.msra.mxu1 %v4080_v28 }
 0x263   : > { %3100 = vmatprep.subr.bf16.mxu1 %v4086_v37 }
 0x266   : > { %3102 = vmatpush3.bf16.msra.mxu1 %v4086_v37 }
 0x267   : > { %3104 = vmatprep.subr.bf16.mxu1 %v4092_v40 }
 0x26a   : > { %3106 = vmatpush3.bf16.msra.mxu1 %v4092_v40 }
 0x26b   : > { %3108 = vmatprep.subr.bf16.mxu1 %v4098_v41 }
 0x26e   : > { %3110 = vmatpush3.bf16.msra.mxu1 %v4098_v41 }
 0x26f   : > { %3112 = vmatprep.subr.bf16.mxu1 %v4104_v52 }
 0x272   : > { %3114 = vmatpush3.bf16.msra.mxu1 %v4104_v52 }
 0x273   : > { %3116 = vmatprep.subr.bf16.mxu1 %v3761_v10 }
 0x275   : > { %2708 = vmatmul.mubr.f32.vlgmr.msra.gmra.mrb[0].mxu1 %v4197_v61 }
 0x276   : > { %2710 = vmatprep.mubr.f32.mxu1 %v4219_v6  ;;  %3118 = vmatpush3.bf16.msra.mxu1 %v3761_v10 }
 0x277   : > { %3120 = vmatprep.subr.bf16.mxu1 %v3763_v13 }
 0x279   : > { %2711 = vmatmul.mubr.f32.gmra.mrb[2].mxu1 %v4213_v55 }
 0x27a   : > { %3122 = vmatpush3.bf16.msra.mxu1 %v3763_v13  ;;  %2745 = vmatprep.mubr.f32.mxu1 %v1240_v53 }
 0x27b   : > { %3124 = vmatprep.subr.bf16.mxu1 %v3780_v21 }
 0x27e   : > { %3126 = vmatpush3.bf16.msra.mxu1 %v3780_v21 }
 0x27f   : > { %3128 = vmatprep.subr.bf16.mxu1 %v3810_v32 }
 0x282   : > { %3130 = vmatpush3.bf16.msra.mxu1 %v3810_v32 }
 0x283   : > { %3132 = vmatprep.subr.bf16.mxu1 %v3842_v46 }
 0x286   : > { %3134 = vmatpush3.bf16.msra.mxu1 %v3842_v46 }
 0x287   : > { %3136 = vmatprep.subr.bf16.mxu1 %v3864_v62 }
 0x28a   : > { %3138 = vmatpush3.bf16.msra.mxu1 %v3864_v62 }
 0x28b   : > { %3140 = vmatprep.subr.bf16.mxu1 %v3885_v9 }
 0x28e   : > { %3142 = vmatpush3.bf16.msra.mxu1 %v3885_v9 }
 0x28f   : > { %3144 = vmatprep.subr.bf16.mxu1 %v3888_v11 }
 0x292   : > { %3146 = vmatpush3.bf16.msra.mxu1 %v3888_v11 }
 0x293   : > { %3148 = vmatprep.subr.bf16.mxu1 %v3986_v20 }
 0x295   : > { %2746 = vmatmul.mubr.f32.vlgmr.msra.gmra.mrb[0].mxu1 %v1250_v12 }
 0x296   : > { %2748 = vmatprep.mubr.f32.mxu1 %v1260_v14  ;;  %3150 = vmatpush3.bf16.msra.mxu1 %v3986_v20 }
 0x297   : > { %3152 = vmatprep.subr.bf16.mxu1 %v3992_v50 }
 0x299   : > { %2749 = vmatmul.mubr.f32.gmra.mrb[2].mxu1 %v1270_v27 }
 0x29a   : > { %3154 = vmatpush3.bf16.msra.mxu1 %v3992_v50  ;;  %2783 = vmatprep.mubr.f32.mxu1 %v4191_v39  ;;  %v2122_v50 = vld [vmem:[%s344_s23] ss:$0 sm:$0xff] }
 0x29b   : > { %3156 = vmatprep.subr.bf16.mxu1 %v4000_v48 }
 0x29e   : > { %3158 = vmatpush3.bf16.msra.mxu1 %v4000_v48  ;;  %v2121_v48 = vld [vmem:[%s339_s19] ss:$0 sm:$0xff] }
 0x29f   : > { %3160 = vmatprep.subr.bf16.mxu1 %v4002_v8 }
 0x2a2   : > { %3162 = vmatpush3.bf16.msra.mxu1 %v4002_v8 }
 0x2a3   : > { %3164 = vmatprep.subr.bf16.mxu1 %v4004_v36 }
 0x2a6   : > { %3166 = vmatpush3.bf16.msra.mxu1 %v4004_v36 }
 0x2a7   : > { %3168 = vmatprep.subr.bf16.mxu1 %v4010_v56 }
 0x2aa   : > { %3170 = vmatpush3.bf16.msra.mxu1 %v4010_v56 }
 0x2ab   : > { %3172 = vmatprep.subr.bf16.mxu1 %v4012_v38 }
 0x2ae   : > { %3174 = vmatpush3.bf16.msra.mxu1 %v4012_v38 }
 0x2af   : > { %3176 = vmatprep.subr.bf16.mxu1 %v4017_v17 }
 0x2b2   : > { %3178 = vmatpush3.bf16.msra.mxu1 %v4017_v17 }
 0x2b3   : > { %3180 = vmatprep.subr.bf16.mxu1 %v3761_v10 }
 0x2b5   : > { %2784 = vmatmul.mubr.f32.vlgmr.msra.gmra.mrb[0].mxu1 %v4186_v47 }
 0x2b6   : > { %2786 = vmatprep.mubr.f32.mxu1 %v4209_v63  ;;  %3182 = vmatpush3.bf16.msra.mxu1 %v3761_v10 }
 0x2b7   : > { %3184 = vmatprep.subr.bf16.mxu1 %v3763_v13 }
 0x2b9   : > { %2787 = vmatmul.mubr.f32.gmra.mrb[2].mxu1 %v4206_v1 }
 0x2ba   : > { %3186 = vmatpush3.bf16.msra.mxu1 %v3763_v13  ;;  %2821 = vmatprep.mubr.f32.mxu1 %v4191_v39 }
 0x2bb   : > { %3188 = vmatprep.subr.bf16.mxu1 %v3780_v21 }
 0x2be   : > { %3190 = vmatpush3.bf16.msra.mxu1 %v3780_v21 }
 0x2bf   : > { %3192 = vmatprep.subr.bf16.mxu1 %v3810_v32 }
 0x2c2   : > { %3194 = vmatpush3.bf16.msra.mxu1 %v3810_v32 }
 0x2c3   : > { %3196 = vmatprep.subr.bf16.mxu1 %v3842_v46 }
 0x2c6   : > { %3198 = vmatpush3.bf16.msra.mxu1 %v3842_v46 }
 0x2c7   : > { %3200 = vmatprep.subr.bf16.mxu1 %v3864_v62 }
 0x2ca   : > { %3202 = vmatpush3.bf16.msra.mxu1 %v3864_v62 }
 0x2cb   : > { %3204 = vmatprep.subr.bf16.mxu1 %v3885_v9 }
 0x2ce   : > { %3206 = vmatpush3.bf16.msra.mxu1 %v3885_v9 }
 0x2cf   : > { %3208 = vmatprep.subr.bf16.mxu1 %v3888_v11 }
 0x2d2   : > { %3210 = vmatpush3.bf16.msra.mxu1 %v3888_v11 }
 0x2d5   : > { %2822 = vmatmul.mubr.f32.vlgmr.msra.gmra.mrb[0].mxu1 %v4186_v47 }
 0x2d6   : > { %2824 = vmatprep.mubr.f32.mxu1 %v4209_v63 }
 0x2d9   : > { %2825 = vmatmul.mubr.f32.gmra.mrb[2].mxu1 %v4206_v1 }
 0x3a8   : > { %v2823_v10 = vpop.f32.mrb[0].mxu1 }
 0x3a9   : > { %v1928_v13 = vmul.f32 0.03125, %v2823_v10  ;;  %v1905_v21 = vpop.f32.mrb[1].mxu1 }
 0x3aa   : > { %v1927_v32 = vmul.f32 0.03125, %v1905_v21 }
 0x3ab   : > { %v1932_v38 = vadd.f32 1e-05, %v1928_v13 }
 0x3ac   : > { %v1931_v46 = vadd.f32 1e-05, %v1927_v32  ;;  %v2826_v62 = vpop.f32.mrb[2].mxu1 }
 0x3ad   : > { %3318 = vrsqrt.f32 %v1932_v38  ;;  %v1930_v8 = vmul.f32 0.03125, %v2826_v62  ;;  %v1917_v9 = vpop.f32.mrb[3].mxu1 }
 0x3ae   : > { %3320 = vrsqrt.f32 %v1931_v46  ;;  %v1929_v11 = vmul.f32 0.03125, %v1917_v9 }
 0x3af   : > { %v1934_v17 = vadd.f32 1e-05, %v1930_v8 }
 0x3b0   : > { %v1933_v45 = vadd.f32 1e-05, %v1929_v11 }
 0x3b1   : > { %3322 = vrsqrt.f32 %v1934_v17 }
 0x3b2   : > { %3324 = vrsqrt.f32 %v1933_v45 }
 0x3b7   : > { %v3319_v33 = vpop.eup %3318 }
 0x3b8   : > { %v3321_v19 = vpop.eup %3320  ;;  %v1940_v20 = vmul.f32 %v3319_v33, %v4177_v30 }
 0x3b9   : > { %v1939_v36 = vmul.f32 %v3321_v19, %v4180_v26 }
 0x3ba   : > { %v1951_v56 = vmul.f32 %v2121_v48, %v1940_v20 }
 0x3bb   : > { %v3323_v54 = vpop.eup %3322  ;;  %v1950_v49 = vmul.f32 %v2121_v48, %v1939_v36 }
 0x3bc   : > { %v3325_v23 = vpop.eup %3324  ;;  %v1962_v29 = vadd.f32 %v2122_v50, %v1951_v56  ;;  %v1942_v34 = vmul.f32 %v3323_v54, %v4189_v44 }
 0x3bd   : > { %v1961_v16 = vadd.f32 %v2122_v50, %v1950_v49  ;;  %v1941_v0 = vmul.f32 %v3325_v23, %v4194_v51 }
 0x3be   : > { %1966 = vst [vmem:[%s333_s24 + $0x8] sm:$0xff] %v1962_v29  ;;  %v1953_v25 = vmul.f32 %v2121_v48, %v1942_v34 }
 0x3bf   : > { %1965 = vst [vmem:[%s333_s24] sm:$0xff] %v1961_v16  ;;  %v1952_v28 = vmul.f32 %v2121_v48, %v1941_v0 }
 0x3c0   : > { %v1964_v37 = vadd.f32 %v2122_v50, %v1953_v25 }
 0x3c1   : > { %v1963_v40 = vadd.f32 %v2122_v50, %v1952_v28 }
 0x3c2   : > { %1968 = vst [vmem:[%s333_s24 + $0x18] sm:$0xff] %v1964_v37 }
 0x3c3   : > { %1967 = vst [vmem:[%s333_s24 + $0x10] sm:$0xff] %v1963_v40 }
 0x3c4   : > { %3437 = shalt.err (!%p3434_p0)
}
 0x3c5   : > { %s3438_s30 = scalar_lea.hbm %s4348_s27, 512  ;;  %s3442_s11 = scalar_lea.hbm %s4399_s6, 1536 }
 0x3c6   : > { %p3439_p3 = scmp.ne.s32.totalorder %s4348_s27, %s3438_s30  ;;  %p3443_p2 = scmp.lt.u32.totalorder %s4348_s27, %s4399_s6 }
 0x3c7   : > { %p3444_p6 = scmp.lt.u32.totalorder %s3442_s11, %s3438_s30  ;;  %p3446_p12 = scmp.lt.u32.totalorder %s3438_s30, %s4348_s27 }
 0x3c8   : > { %p3440_p7 = pnand %p3439_p3, %p3644_p1 }
 0x3c9   : > { %p3445_p10 = por %p3444_p6, %p3443_p2 }
 0x3ca   : > { %p3441_p13 = pneg %p3440_p7 }
 0x3cb   : > { %p3447_p4 = por %p3446_p12, %p3445_p10 }
 0x3cd   : > { %p3448_p8 = pnand %p3447_p4, %p3441_p13 }
 0x3cf   : > { %3451 = shalt.err (!%p3448_p8)
}
 0x3d0   : > { %s3509_s17 = smov 128   ;;  %s3510_s29 = smov 8  }
 0x3d1   : > { %3259 = dma.vmem_to_hbm [thread:$0]  (%p3644_p1), %s4350_s16, 512, %s4348_s27, %s1970_s0, %s3509_s17, %s3509_s17, %s3510_s29  }
 0x3d2 PF: > { %p3279_p5 = scmp.ge.s32.totalorder %s3500_s10, 2  ;;  %s1998_s23 = sand.u32 1, %s3488_s7  }
 0x3d3   : > { %p4447_p9 = scmp.ne.s32.totalorder %s4420_s13, 0  ;;  %s1999_s5 = scalar_lea.sflag [#allocation6], %s1998_s23 }
 0x3d5   : > { %p3273_p11 = pnand %p3279_p5, %p4447_p9 }
 0x3d7   : > { %3483 = dma.done.wait (!%p3273_p11), %s1999_s5, 512  }
 0x3d8   : > { %3485 = vsyncadd (!%p3273_p11), %s1999_s5, 4294966784  ;;  %s4448_s24 = sld [smem:[#allocation16_spill]]  ;;  %s4449_s9 = sld [smem:[#allocation17_spill]] }
 0x3d9   : > { %p26_p0 = scmp.ge.s32.totalorder %s3611_s18, 5   ;;  %s4450_s7 = smov %s3492_s8 }
 0x3da   : > { %s4452_s10 = smov %s3611_s18 }
 0x3db   :  { %28 = sbr.rel (!%p26_p0) target bundleno = 20 (0x14), region = 108 }
 0x3de   : > { %s4451_s8 = smov %s4448_s24 }
 0x3e2   :  { %2004 = vsyncpa [#allocation5], 1 }
 0x3e3   :  { %2006 = vsyncpa [#allocation5 + $0x1], 1 }
 0x3e4   :  { %2007 = vsyncpa [#allocation8], 1 }
 0x3e5   :  { %2009 = vsyncpa [#allocation8 + $0x1], 1 }
 0x3e6   :  { %2010 = vsyncpa [#allocation6], 1 }
 0x3e7   :  { %2012 = vsyncpa [#allocation6 + $0x1], 1 }

</bundles_post_ra>
